<compile_context>
chip_gen: v7x
topology: tpu7x:2x2x1
jax: 0.10.0
libtpu: 0.0.40
codegen_flags: <defaults>
</compile_context>

<pallas_src>
import math
import functools

import jax
import jax.numpy as jnp
from jax.experimental import pallas as pl
from jax.experimental.pallas import tpu as pltpu


_LN_EPS = 1e-5
_MM_DTYPE = jnp.bfloat16          # MXU operand dtype (accumulation is always f32)


def _gelu_tanh(x):
    return 0.5 * x * (1.0 + jnp.tanh(0.7978845608028654 * (x + 0.044715 * x * x * x)))


@functools.lru_cache(maxsize=None)
def _vmem_budget_bytes():
    """Generation-aware scoped-VMEM budget: ~3/4 of physical, capped at 100 MiB."""
    cap = 64 * 1024 * 1024
    try:
        info = pltpu.get_tpu_info()
        cap = int(getattr(info, "vmem_capacity_bytes", cap) or cap)
    except Exception:
        pass
    return int(max(32 * 1024 * 1024, min((cap * 3) // 4, 100 * 1024 * 1024)))


def _pick_m_tile(m):
    """Tile size along M = B*S; bigger tiles on 128 MiB parts (v5e/v6e) than on v7x."""
    cap = 1024 if _vmem_budget_bytes() >= 80 * 1024 * 1024 else 512
    if m <= cap:
        return m
    for tm in (cap, cap // 2, cap // 4, 128):
        if m % tm == 0:
            return tm
    return cap  # ragged tail handled by Pallas block clipping


# ---------------------------------------------------------------------------
# Parameter preparation (done ONCE, outside the forward path):
#   - fuse Q/K/V weights/biases into a single [H, 3H] / [3H] pair,
#   - fold the 1/sqrt(head_dim) scale into the Q third,
#   - cast matmul weights to bf16 (biases / LayerNorm params stay f32).
# ---------------------------------------------------------------------------
def prepare_layer_params(params, num_attention_heads, mm_dtype=_MM_DTYPE):
    H = params["wq"].shape[0]
    d = H // num_attention_heads
    scale = 1.0 / math.sqrt(d)
    wqkv = jnp.concatenate([params["wq"] * scale, params["wk"], params["wv"]], axis=1)
    bqkv = jnp.concatenate([params["bq"] * scale, params["bk"], params["bv"]])
    f32 = jnp.float32
    return {
        "wqkv": wqkv.astype(mm_dtype), "bqkv": bqkv.astype(f32),
        "wo": params["wo"].astype(mm_dtype), "bo": params["bo"].astype(f32),
        "ln1_g": params["ln1_g"].astype(f32), "ln1_b": params["ln1_b"].astype(f32),
        "wi": params["wi"].astype(mm_dtype), "bi": params["bi"].astype(f32),
        "wo2": params["wo2"].astype(mm_dtype), "bo2": params["bo2"].astype(f32),
        "ln2_g": params["ln2_g"].astype(f32), "ln2_b": params["ln2_b"].astype(f32),
    }


# ---------------------------------------------------------------------------
# Kernel 1: dense + bias (fused QKV projection, [H, 3H] weight resident in VMEM).
# ---------------------------------------------------------------------------
def _dense_bias_kernel(x_ref, w_ref, b_ref, o_ref):
    x = x_ref[...].astype(w_ref.dtype)
    y = jnp.dot(x, w_ref[...], preferred_element_type=jnp.float32) + b_ref[...]
    o_ref[...] = y.astype(o_ref.dtype)


def dense_bias(x2d, w, b):
    M, Hin = x2d.shape
    Hout = w.shape[1]
    tm = _pick_m_tile(M)
    return pl.pallas_call(
        _dense_bias_kernel,
        out_shape=jax.ShapeDtypeStruct((M, Hout), x2d.dtype),
        grid=(pl.cdiv(M, tm),),
        in_specs=[pl.BlockSpec((tm, Hin), lambda i: (i, 0)),     # activations: pipelined over M
                  pl.BlockSpec((Hin, Hout), lambda i: (0, 0)),   # bf16 weight: resident in VMEM
                  pl.BlockSpec((1, Hout), lambda i: (0, 0))],
        out_specs=pl.BlockSpec((tm, Hout), lambda i: (i, 0)),    # lane-dense (Hout last)
        compiler_params=pltpu.CompilerParams(
            dimension_semantics=("parallel",),
            vmem_limit_bytes=_vmem_budget_bytes()),
    )(x2d, w, b.reshape(1, Hout))


# ---------------------------------------------------------------------------
# Kernel 2: dense + bias + residual + LayerNorm (RobertaSelfOutput).
# ---------------------------------------------------------------------------
def _dense_residual_ln_kernel(x_ref, res_ref, w_ref, b_ref, g_ref, beta_ref, o_ref, *, eps):
    x = x_ref[...].astype(w_ref.dtype)
    y = jnp.dot(x, w_ref[...], preferred_element_type=jnp.float32) + b_ref[...]
    y = y + res_ref[...].astype(jnp.float32)
    mu = jnp.mean(y, axis=-1, keepdims=True)
    yc = y - mu
    var = jnp.mean(yc * yc, axis=-1, keepdims=True)
    o_ref[...] = (yc * jax.lax.rsqrt(var + eps) * g_ref[...] + beta_ref[...]).astype(o_ref.dtype)


def dense_residual_layernorm(x2d, res2d, w, b, gamma, beta, eps=_LN_EPS):
    M, Hin = x2d.shape
    Hout = w.shape[1]
    tm = _pick_m_tile(M)
    kernel = functools.partial(_dense_residual_ln_kernel, eps=eps)
    return pl.pallas_call(
        kernel,
        out_shape=jax.ShapeDtypeStruct((M, Hout), res2d.dtype),
        grid=(pl.cdiv(M, tm),),
        in_specs=[pl.BlockSpec((tm, Hin), lambda i: (i, 0)),
                  pl.BlockSpec((tm, Hout), lambda i: (i, 0)),
                  pl.BlockSpec((Hin, Hout), lambda i: (0, 0)),
                  pl.BlockSpec((1, Hout), lambda i: (0, 0)),
                  pl.BlockSpec((1, Hout), lambda i: (0, 0)),
                  pl.BlockSpec((1, Hout), lambda i: (0, 0))],
        out_specs=pl.BlockSpec((tm, Hout), lambda i: (i, 0)),
        compiler_params=pltpu.CompilerParams(
            dimension_semantics=("parallel",),
            vmem_limit_bytes=_vmem_budget_bytes()),
    )(x2d, res2d, w, b.reshape(1, Hout), gamma.reshape(1, Hout), beta.reshape(1, Hout))


# ---------------------------------------------------------------------------
# Kernel 3: fused FFN: dense+GELU -> dense+bias+residual+LN.  The [tm, 4H]
# intermediate lives only in VMEM; the residual is the x tile itself.
# ---------------------------------------------------------------------------
def _ffn_fused_kernel(x_ref, wi_ref, bi_ref, wo_ref, bo_ref, g_ref, beta_ref, o_ref, *, eps):
    x = x_ref[...]
    h = jnp.dot(x.astype(wi_ref.dtype), wi_ref[...],
                preferred_element_type=jnp.float32) + bi_ref[...]
    h = _gelu_tanh(h)
    y = jnp.dot(h.astype(wo_ref.dtype), wo_ref[...],
                preferred_element_type=jnp.float32) + bo_ref[...]
    y = y + x.astype(jnp.float32)
    mu = jnp.mean(y, axis=-1, keepdims=True)
    yc = y - mu
    var = jnp.mean(yc * yc, axis=-1, keepdims=True)
    o_ref[...] = (yc * jax.lax.rsqrt(var + eps) * g_ref[...] + beta_ref[...]).astype(o_ref.dtype)


def ffn_fused(x2d, wi, bi, wo2, bo2, gamma, beta, eps=_LN_EPS):
    M, H = x2d.shape
    I = wi.shape[1]
    tm = _pick_m_tile(M)
    kernel = functools.partial(_ffn_fused_kernel, eps=eps)
    return pl.pallas_call(
        kernel,
        out_shape=jax.ShapeDtypeStruct((M, H), x2d.dtype),
        grid=(pl.cdiv(M, tm),),
        in_specs=[pl.BlockSpec((tm, H), lambda i: (i, 0)),
                  pl.BlockSpec((H, I), lambda i: (0, 0)),
                  pl.BlockSpec((1, I), lambda i: (0, 0)),
                  pl.BlockSpec((I, H), lambda i: (0, 0)),
                  pl.BlockSpec((1, H), lambda i: (0, 0)),
                  pl.BlockSpec((1, H), lambda i: (0, 0)),
                  pl.BlockSpec((1, H), lambda i: (0, 0))],
        out_specs=pl.BlockSpec((tm, H), lambda i: (i, 0)),
        compiler_params=pltpu.CompilerParams(
            dimension_semantics=("parallel",),
            vmem_limit_bytes=_vmem_budget_bytes()),
    )(x2d, wi, bi.reshape(1, I), wo2, bo2.reshape(1, H),
      gamma.reshape(1, H), beta.reshape(1, H))


# ---------------------------------------------------------------------------
# Kernel 4: multi-head attention with the head split/merge fused on-chip.
#   Input: fused qkv [B, S, 3H] (lane-dense).  Per batch element, q/k/v columns
#   are sliced in VMEM, heads are processed in an unrolled loop (static lane
#   slices), and the context is written back as one lane-dense (S, H) block.
#   1/sqrt(d) is pre-folded into the Q weights, so no score scaling here.
# ---------------------------------------------------------------------------
def _attention_kernel(*refs, num_heads, head_dim, hidden, has_mask, emit_probs, mm_dtype):
    qkv_ref = refs[0]
    idx = 1
    mask_ref = None
    if has_mask:
        mask_ref = refs[idx]
        idx += 1
    ctx_ref = refs[idx]
    idx += 1
    probs_ref = refs[idx] if emit_probs else None

    qkv = qkv_ref[0]                                   # (S, 3H) f32
    q = qkv[:, :hidden].astype(mm_dtype)               # (S, H), scale already folded in
    k = qkv[:, hidden:2 * hidden].astype(mm_dtype)
    v = qkv[:, 2 * hidden:].astype(mm_dtype)
    mask = mask_ref[0, 0].astype(jnp.float32) if has_mask else None   # (1 or S, S)

    ctx_cols = []
    for h in range(num_heads):
        lo = h * head_dim
        qh = q[:, lo:lo + head_dim]                    # (S, d)
        kh = k[:, lo:lo + head_dim]
        vh = v[:, lo:lo + head_dim]
        # q @ k^T without materializing the transpose (contract on d of both operands).
        s = jax.lax.dot_general(qh, kh, (((1,), (1,)), ((), ())),
                                preferred_element_type=jnp.float32)    # (S, S)
        if has_mask:
            s = s + mask
        m = jnp.max(s, axis=-1, keepdims=True)
        e = jnp.exp(s - m)
        den = jnp.sum(e, axis=-1, keepdims=True)
        if emit_probs:
            p = e / den                                # exact: emitted rows sum to 1
            probs_ref[0, h] = p.astype(probs_ref.dtype)
        else:
            p = e * pl.reciprocal(den, approx=True)    # EUP approx reciprocal (free slot)
        ctx_cols.append(jnp.dot(p.astype(mm_dtype), vh,
                                preferred_element_type=jnp.float32))   # (S, d)
    ctx_ref[0] = jnp.concatenate(ctx_cols, axis=-1).astype(ctx_ref.dtype)  # lane-dense (S, H)


def fused_attention(qkv3d, attention_mask, num_heads, output_attentions, mm_dtype=_MM_DTYPE):
    B, S, H3 = qkv3d.shape
    H = H3 // 3
    d = H // num_heads

    in_specs = [pl.BlockSpec((1, S, H3), lambda b: (b, 0, 0))]
    args = [qkv3d]
    has_mask = attention_mask is not None
    if has_mask:
        mask = attention_mask.astype(jnp.float32)      # [B, 1, 1 or S, S] additive
        mq = mask.shape[2]
        in_specs.append(pl.BlockSpec((1, 1, mq, S), lambda b: (b, 0, 0, 0)))
        args.append(mask)

    out_shape = [jax.ShapeDtypeStruct((B, S, H), qkv3d.dtype)]
    out_specs = [pl.BlockSpec((1, S, H), lambda b: (b, 0, 0))]
    if output_attentions:
        out_shape.append(jax.ShapeDtypeStruct((B, num_heads, S, S), jnp.float32))
        out_specs.append(pl.BlockSpec((1, num_heads, S, S), lambda b: (b, 0, 0, 0)))

    kernel = functools.partial(_attention_kernel, num_heads=num_heads, head_dim=d,
                               hidden=H, has_mask=has_mask,
                               emit_probs=output_attentions, mm_dtype=mm_dtype)
    outs = pl.pallas_call(
        kernel,
        out_shape=tuple(out_shape),
        grid=(B,),
        in_specs=in_specs,
        out_specs=tuple(out_specs),
        compiler_params=pltpu.CompilerParams(
            dimension_semantics=("parallel",),
            vmem_limit_bytes=_vmem_budget_bytes()),
    )(*args)

    if output_attentions:
        ctx, probs = outs
        return ctx, probs
    return outs[0], None


# ---------------------------------------------------------------------------
# Full ProbeRobertaLayer forward (self-attention path, eval mode).
# `params` must come from prepare_layer_params() (fused/scaled/bf16-cast once).
# ---------------------------------------------------------------------------
def probe_roberta_layer(hidden_states, params, num_attention_heads,
                        attention_mask=None, output_attentions=False):
    B, S, H = hidden_states.shape
    M = B * S
    x2d = hidden_states.reshape(M, H)

    # fused QKV projection (single [H, 3H] weight, one pass over x); reshape to [B,S,3H] is free
    qkv = dense_bias(x2d, params["wqkv"], params["bqkv"])
    qkv3d = qkv.reshape(B, S, 3 * H)

    # multi-head attention with on-chip head split/merge; ctx comes back lane-dense [B,S,H]
    ctx, probs = fused_attention(qkv3d, attention_mask, num_attention_heads, output_attentions)
    ctx2d = ctx.reshape(M, H)

    # attention output: dense + residual + LayerNorm (dropout = identity in eval)
    attn_out = dense_residual_layernorm(ctx2d, x2d, params["wo"], params["bo"],
                                        params["ln1_g"], params["ln1_b"])

    # fused feed-forward: dense+GELU -> dense+residual+LayerNorm (intermediate stays in VMEM)
    layer_out = ffn_fused(attn_out, params["wi"], params["bi"], params["wo2"], params["bo2"],
                          params["ln2_g"], params["ln2_b"])
    layer_out = layer_out.reshape(B, S, H)

    if output_attentions:
        return layer_out, probs
    return (layer_out,)


# ---------------------------------------------------------------------------
# Plain-JAX f32 reference for sanity check (uses the raw, unfused parameters)
# ---------------------------------------------------------------------------
def _reference(hidden_states, params, nH, attention_mask=None):
    B, S, H = hidden_states.shape
    d = H // nH
    q = hidden_states @ params["wq"] + params["bq"]
    k = hidden_states @ params["wk"] + params["bk"]
    v = hidden_states @ params["wv"] + params["bv"]
    sh = lambda t: t.reshape(B, S, nH, d).transpose(0, 2, 1, 3)
    qh, kh, vh = sh(q), sh(k), sh(v)
    scores = jnp.einsum("bhqd,bhkd->bhqk", qh, kh) / math.sqrt(d)
    if attention_mask is not None:
        scores = scores + attention_mask
    probs = jax.nn.softmax(scores, axis=-1)
    ctx = jnp.einsum("bhqk,bhkd->bhqd", probs, vh).transpose(0, 2, 1, 3).reshape(B, S, H)

    def ln(x, g, b):
        mu = x.mean(-1, keepdims=True)
        var = ((x - mu) ** 2).mean(-1, keepdims=True)
        return (x - mu) * jax.lax.rsqrt(var + _LN_EPS) * g + b

    attn_out = ln(ctx @ params["wo"] + params["bo"] + hidden_states,
                  params["ln1_g"], params["ln1_b"])
    inter = _gelu_tanh(attn_out @ params["wi"] + params["bi"])
    layer_out = ln(inter @ params["wo2"] + params["bo2"] + attn_out,
                   params["ln2_g"], params["ln2_b"])
    return layer_out, probs


if __name__ == "__main__":
    # toy config: hidden=32, heads=4 (head_size=8), intermediate=64, batch=2, seq=8
    B, S, H, nH = 2, 8, 32, 4
    inter_size = 64

    key = jax.random.PRNGKey(0)
    ks = jax.random.split(key, 20)

    def lin(kw, kb, fan_in, fan_out):
        bound = 1.0 / math.sqrt(fan_in)
        w = jax.random.uniform(kw, (fan_in, fan_out), jnp.float32, -bound, bound)
        b = jax.random.uniform(kb, (fan_out,), jnp.float32, -bound, bound)
        return w, b

    wq, bq = lin(ks[0], ks[1], H, H)
    wk, bk = lin(ks[2], ks[3], H, H)
    wv, bv = lin(ks[4], ks[5], H, H)
    wo, bo = lin(ks[6], ks[7], H, H)
    wi, bi = lin(ks[8], ks[9], H, inter_size)
    wo2, bo2 = lin(ks[10], ks[11], inter_size, H)
    raw_params = {
        "wq": wq, "bq": bq, "wk": wk, "bk": bk, "wv": wv, "bv": bv,
        "wo": wo, "bo": bo,
        "ln1_g": 1.0 + 0.1 * jax.random.normal(ks[12], (H,), jnp.float32),
        "ln1_b": 0.1 * jax.random.normal(ks[13], (H,), jnp.float32),
        "wi": wi, "bi": bi, "wo2": wo2, "bo2": bo2,
        "ln2_g": 1.0 + 0.1 * jax.random.normal(ks[14], (H,), jnp.float32),
        "ln2_b": 0.1 * jax.random.normal(ks[15], (H,), jnp.float32),
    }
    params = prepare_layer_params(raw_params, nH)    # fused / scaled / bf16-cast ONCE

    hidden_states = jax.random.normal(ks[16], (B, S, H), jnp.float32)
    # additive key-padding mask [B, 1, 1, S]: last 2 key positions of batch 1 masked out
    attn_mask = jnp.zeros((B, 1, 1, S), jnp.float32).at[1, 0, 0, -2:].set(-10000.0)

    layer_out, probs = probe_roberta_layer(hidden_states, params, nH,
                                           attention_mask=attn_mask,
                                           output_attentions=True)
    layer_out = jax.block_until_ready(layer_out)
    probs = jax.block_until_ready(probs)

    ref_out, ref_probs = _reference(hidden_states, raw_params, nH, attention_mask=attn_mask)
    assert layer_out.shape == (B, S, H)
    assert probs.shape == (B, nH, S, S)
    # bf16 MXU operands vs. pure-f32 reference -> relaxed tolerance
    tol = 3e-2
    assert jnp.allclose(layer_out, ref_out, atol=tol, rtol=tol), \
        float(jnp.max(jnp.abs(layer_out - ref_out)))
    assert jnp.allclose(probs, ref_probs, atol=tol, rtol=tol), \
        float(jnp.max(jnp.abs(probs - ref_probs)))

    # fast path: no mask input, no attention-probs HBM writeback
    (fast_out,) = probe_roberta_layer(hidden_states, params, nH,
                                      attention_mask=None, output_attentions=False)
    fast_out = jax.block_until_ready(fast_out)
    ref_fast, _ = _reference(hidden_states, raw_params, nH, attention_mask=None)
    assert jnp.allclose(fast_out, ref_fast, atol=tol, rtol=tol), \
        float(jnp.max(jnp.abs(fast_out - ref_fast)))

    print("KERNEL_OK")
</pallas_src>

<mosaic_0001>
module attributes {stable_mosaic.version = 11 : i64} {
  func.func @_dense_bias_kernel(%arg0: i32, %arg1: memref<16x32xf32, #tpu.memory_space<vmem>>, %arg2: memref<32x96xbf16, #tpu.memory_space<vmem>>, %arg3: memref<1x96xf32, #tpu.memory_space<vmem>>, %arg4: memref<16x96xf32, #tpu.memory_space<vmem>>) attributes {dimension_semantics = [#tpu.dimension_semantics<parallel>], iteration_bounds = array<i64: 1>, scalar_prefetch = 0 : i64, scratch_operands = 0 : i64, tpu.core_type = #tpu.core_type<tc>, window_params = [{transform_indices = @transform_0, window_bounds = array<i64: 16, 32>}, {pipeline_mode = #tpu.pipeline_mode<synchronous>, transform_indices = @transform_1, window_bounds = array<i64: 32, 96>}, {pipeline_mode = #tpu.pipeline_mode<synchronous>, transform_indices = @transform_2, window_bounds = array<i64: 1, 96>}, {transform_indices = @transform_3, window_bounds = array<i64: 16, 96>}]} {
    %c0 = arith.constant 0 : index
    %c0_0 = arith.constant 0 : index
    %0 = vector.load %arg1[%c0, %c0_0] : memref<16x32xf32, #tpu.memory_space<vmem>>, vector<16x32xf32>
    %1 = arith.truncf %0 : vector<16x32xf32> to vector<16x32xbf16>
    %c0_1 = arith.constant 0 : index
    %c0_2 = arith.constant 0 : index
    %2 = vector.load %arg2[%c0_1, %c0_2] : memref<32x96xbf16, #tpu.memory_space<vmem>>, vector<32x96xbf16>
    %cst = arith.constant dense<0.000000e+00> : vector<16x96xf32>
    %3 = tpu.matmul %1, %2, %cst {dimension_numbers = #tpu.dot_dimension_numbers<[1], [0], [0], [1], [0, 0, 1, 1], [], []>} : vector<16x32xbf16>, vector<32x96xbf16>, vector<16x96xf32> -> vector<16x96xf32>
    %c0_3 = arith.constant 0 : index
    %c0_4 = arith.constant 0 : index
    %4 = vector.load %arg3[%c0_3, %c0_4] : memref<1x96xf32, #tpu.memory_space<vmem>>, vector<1x96xf32>
    %5 = vector.broadcast %4 : vector<1x96xf32> to vector<16x96xf32>
    %6 = arith.addf %3, %5 : vector<16x96xf32>
    %c0_5 = arith.constant 0 : index
    %c0_6 = arith.constant 0 : index
    %7 = vector.load %arg4[%c0_5, %c0_6] : memref<16x96xf32, #tpu.memory_space<vmem>>, vector<16x96xf32>
    tpu.vector_store %arg4[%c0_5, %c0_6], %6 {strides = array<i32>} : memref<16x96xf32, #tpu.memory_space<vmem>>, vector<16x96xf32>,
    return
  }
  func.func @transform_0(%arg0: i32) -> (i32, i32) {
    %c0_i32 = arith.constant 0 : i32
    %c0_i32_0 = arith.constant 0 : i32
    return %arg0, %c0_i32 : i32, i32
  }
  func.func @transform_1(%arg0: i32) -> (i32, i32) {
    %c0_i32 = arith.constant 0 : i32
    %c0_i32_0 = arith.constant 0 : i32
    %c0_i32_1 = arith.constant 0 : i32
    return %c0_i32, %c0_i32_0 : i32, i32
  }
  func.func @transform_2(%arg0: i32) -> (i32, i32) {
    %c0_i32 = arith.constant 0 : i32
    %c0_i32_0 = arith.constant 0 : i32
    %c0_i32_1 = arith.constant 0 : i32
    return %c0_i32, %c0_i32_0 : i32, i32
  }
  func.func @transform_3(%arg0: i32) -> (i32, i32) {
    %c0_i32 = arith.constant 0 : i32
    %c0_i32_0 = arith.constant 0 : i32
    return %arg0, %c0_i32 : i32, i32
  }
}

</mosaic_0001>

<bundles_post_ra>
// kernel: tpu_custom_call.1
= control target key start
LH: loop header
LB: loop body
LE: loop exit
PB: predicated region body
PF: predicated region fallthrough
CT: control target
= control target key end

     0   :  { %8 = vsyncpa [#allocation3], 0  ;;  %s308_s0 = inlined_call_operand.hbm [shape: f32[16,32], index: 0, kind: input, shape index: {}]   ;;  %s309_s1 = inlined_call_operand.hbm [shape: bf16[32,96], index: 1, kind: input, shape index: {}]   ;;  %s310_s2 = inlined_call_operand.vmem [shape: f32[1,96], index: 2, kind: input, shape index: {}]   ;;  %s311_s3 = inlined_call_operand.hbm [shape: f32[16,96], index: 3, kind: output, shape index: {}]  }
   0x1   :  { %9 = vsyncpa [#allocation6], 0 }
   0x2   :  { %10 = vsyncpa [#allocation4], 0  ;;  %s234_s12 = smov [#allocation2]   ;;  %s162_s16 = scalar_lea.hbm %s308_s0, 256 }
   0x3   :  { %s16_s13 = sshll.u32 %s234_s12, 4  ;;  %p163_p0 = scmp.ne.s32.totalorder %s308_s0, %s162_s16  ;;  %s17_s13 = int_to_ptr.vmem [resolvable:$true] %s16_s13 }
   0x4   :  { %p166_p1 = scmp.lt.u32.totalorder %s162_s16, %s308_s0 }
   0x6   :  { %p168_p2 = pnand %p166_p1, %p163_p0 }
   0x8   :  { %171 = shalt.err (!%p168_p2)
}
   0x9   :  { %s172_s21 = scalar_lea.vmem %s17_s13, 256  ;;  %p177_p4 = scmp.lt.s32.totalorder %s17_s13, %s17_s13 }
   0xa   :  { %p173_p3 = scmp.ne.s32.totalorder %s17_s13, %s172_s21  ;;  %p178_p5 = scmp.lt.s32.totalorder %s172_s21, %s172_s21 }
   0xc   :  { %p179_p6 = por %p178_p5, %p177_p4 }
   0xe   :  { %p180_p7 = pnand %p179_p6, %p173_p3 }
  0x10   :  { %183 = shalt.err (!%p180_p7)
}
  0x11   :  { %s235_s22 = smov 128   ;;  %s236_s23 = smov 8  }
  0x12   :  { %22 = dma.hbm_to_vmem [thread:$0]  %s308_s0, 256, %s17_s13, [#allocation3], %s235_s22, %s235_s22, %s236_s23  }
  0x13   :  { %s237_s26 = smov [#allocation5]   ;;  %s184_s30 = scalar_lea.hbm %s309_s1, 256 }
  0x14   :  { %s28_s27 = sshll.u32 %s237_s26, 4  ;;  %p185_p8 = scmp.ne.s32.totalorder %s309_s1, %s184_s30  ;;  %s29_s27 = int_to_ptr.vmem [resolvable:$true] %s28_s27 }
  0x15   :  { %p188_p9 = scmp.lt.u32.totalorder %s184_s30, %s309_s1 }
  0x17   :  { %p190_p10 = pnand %p188_p9, %p185_p8 }
  0x19   :  { %193 = shalt.err (!%p190_p10)
}
  0x1a   :  { %s194_s8 = scalar_lea.vmem %s29_s27, 256  ;;  %p199_p12 = scmp.lt.s32.totalorder %s29_s27, %s29_s27 }
  0x1b   :  { %p195_p11 = scmp.ne.s32.totalorder %s29_s27, %s194_s8  ;;  %p200_p13 = scmp.lt.s32.totalorder %s194_s8, %s194_s8 }
  0x1d   :  { %p201_p0 = por %p200_p13, %p199_p12 }
  0x1f   :  { %p202_p1 = pnand %p201_p0, %p195_p11 }
  0x21   :  { %205 = shalt.err (!%p202_p1)
}
  0x22   :  { %s238_s0 = smov 64   ;;  %s239_s9 = smov 4  }
  0x23   :  { %34 = dma.hbm_to_vmem [thread:$0]  %s309_s1, 256, %s29_s27, [#allocation6], %s238_s0, %s238_s0, %s239_s9  }
  0x24   :  { %228 = dma.done.wait [#allocation3], 256  }
  0x25   :  { %229 = vsyncadd [#allocation3], 4294967040 }
  0x26   :  { %230 = dma.done.wait [#allocation6], 256  }
  0x27   :  { %231 = vsyncadd [#allocation6], 4294967040  ;;  %v240_v0 = vmov 0.0   ;;  %vm241_vm0 = vmmov 0   ;;  %v160_v1 = vld [vmem:[#allocation5] sm:$0xff]   ;;  %v161_v2 = vld [vmem:[#allocation5 + $0x8] sm:$0xff]  }
  0x28   :  { %143 = vmatprep.subr.bf16.mxu0 %v240_v0  ;;  %147 = vmatprep.mubr.msk.bf16.mxu0 %vm241_vm0, %v240_v0  ;;  %v44_v3 = vld [vmem:[#allocation2] sm:$0xff]  ;;  %v45_v4 = vld [vmem:[#allocation2 + $0x8] sm:$0xff]  ;;  %vm70_vm1 = vcmask 261120   ;;  %vm115_vm2 = vcmask 785408   ;;  %s242_s13 = smov [#allocation7]  }
  0x29   :  { %144 = vmatpush3.bf16.msra.mxu0 %v160_v1  ;;  %v46_v5 = vpack.c.bf16 %v45_v4, %v44_v3  ;;  %v136_v6 = vld [vmem:[%s310_s2] ss:$0 sm:$0xff]  ;;  %s123_s14 = sshll.u32 %s242_s13, 4  ;;  %s124_s14 = int_to_ptr.vmem [resolvable:$true] %s123_s14 }
  0x2a   :  { %145 = vmatprep.subr.bf16.mxu0 %v240_v0  ;;  %s206_s15 = scalar_lea.vmem %s124_s14, 256  ;;  %p211_p3 = scmp.lt.s32.totalorder %s124_s14, %s124_s14 }
  0x2b   :  { %p207_p2 = scmp.ne.s32.totalorder %s124_s14, %s206_s15  ;;  %p212_p4 = scmp.lt.s32.totalorder %s206_s15, %s206_s15 }
  0x2d   :  { %146 = vmatpush3.bf16.msra.mxu0 %v161_v2  ;;  %p213_p5 = por %p212_p4, %p211_p3 }
  0x2f   :  { %p214_p6 = pnand %p213_p5, %p207_p2 }
  0x30   :  { %148 = vmatmul.mubr.msk.bf16.vlgmr.msra.gmra.mrb[0].mxu0 %vm70_vm1, %v46_v5 }
 0x103   :  { %v108_v7 = vpop.f32.mrb[0].mxu0 }
 0x104   :  { %v109_v8 = vadd.f32 %v136_v6, %v108_v7  ;;  %v149_v9 = vpop.f32.mrb[1].mxu0 }
 0x105   :  { %v111_v10 = vpop.f32.mrb[2].mxu0 }
 0x106   :  { %v112_v11 = vadd.f32 %v136_v6, %v111_v10  ;;  %v150_v12 = vpop.f32.mrb[3].mxu0  ;;  %116 = vst.msk [vmem:[#allocation7] sm:$0xff] %vm115_vm2, %v109_v8 }
 0x108   :  { %117 = vst.msk [vmem:[#allocation7 + $0x8] sm:$0xff] %vm115_vm2, %v112_v11 }
 0x109   :  { %217 = shalt.err (!%p214_p6)
}
 0x10a   :  { %s218_s17 = scalar_lea.hbm %s311_s3, 256 }
 0x10b   :  { %p219_p7 = scmp.ne.s32.totalorder %s311_s3, %s218_s17  ;;  %p222_p8 = scmp.lt.u32.totalorder %s218_s17, %s311_s3 }
 0x10d   :  { %p224_p9 = pnand %p222_p8, %p219_p7 }
 0x10f   :  { %227 = shalt.err (!%p224_p9)
}
 0x110   :  { %129 = dma.vmem_to_hbm [thread:$0]  %s124_s14, 256, %s311_s3, [#allocation4], %s235_s22, %s235_s22, %s236_s23  }
 0x111   :  { %232 = dma.done.wait [#allocation4], 256  }
 0x112   :  { %233 = vsyncadd [#allocation4], 4294967040 }
 0x113   :  { %133 = vsyncpa [#allocation3], 1 }
 0x114   :  { %134 = vsyncpa [#allocation6], 1 }
 0x115   :  { %135 = vsyncpa [#allocation4], 1 }

</bundles_post_ra>
